<compile_context>
chip_gen: v7x
topology: tpu7x:2x2x1
jax: 0.10.0
libtpu: 0.0.40
codegen_flags: <defaults>
</compile_context>

<pallas_src>
import functools

import jax
import jax.numpy as jnp
from jax import lax
from jax.experimental import pallas as pl
from jax.experimental.pallas import tpu as pltpu


def _hazard_kernel(log_mode, n_hidden_layers,
                   mu_ref, sigma_ref, bout_ref,        # SMEM scalars, shape (1,)
                   x_ref, yt_ref,                      # [tm, R], [1, tm]
                   wy_ref, wrnn_ref, brnn_ref,         # [H,1], [H,R], [H,1]
                   wl_ref, bl_ref, wout_ref,           # [L,H,H], [L,H,1], [1,H]
                   o_ref):                             # [1, tm]
    # ---- normalize y (batch on lanes, f32) --------------------------------
    y = yt_ref[...].astype(jnp.float32)                # (1, tm)
    if log_mode:
        y = jnp.log(y)
    y_nmlz = (y - mu_ref[0]) / sigma_ref[0]            # (1, tm)

    # ---- first layer: linear_rnn(x) + linear_y(y_nmlz), fused -------------
    # hidden^T = W_rnn(H,R) . x(tm,R)^T  via dot_general contracting on both
    # operands' LAST dims -> (H, tm).  The MXU consumes the transposed RHS
    # natively; no wrapper transpose, no in-kernel XLU transpose.
    h = lax.dot_general(
        wrnn_ref[...], x_ref[...],
        dimension_numbers=(((1,), (1,)), ((), ())),
        preferred_element_type=jnp.float32)            # (H, tm)
    h = jnp.tanh(h + brnn_ref[...]
                 + wy_ref[...].astype(jnp.float32) * y_nmlz)   # (H, tm)

    # ---- hidden MLP stack: (Linear + Tanh) x (layers_num - 1) -------------
    for i in range(n_hidden_layers):
        h = jnp.tanh(
            jnp.dot(wl_ref[i], h.astype(wl_ref.dtype),
                    preferred_element_type=jnp.float32)
            + bl_ref[i])

    # ---- output head: Linear(H, 1) + Softplus ------------------------------
    z = jnp.dot(wout_ref[...], h.astype(wout_ref.dtype),
                preferred_element_type=jnp.float32) + bout_ref[0]   # (1, tm)
    o_ref[...] = jax.nn.softplus(z).astype(o_ref.dtype)


def pt_hazard_forward(x, y, mu_y, sigma_y, params, *, log_mode=True,
                      tm=None, compute_dtype=jnp.bfloat16):
    """Pallas implementation of PT_HAZARD.forward.

    x: [N, rnn_output_dim]; y: [N, 1] (positive when log_mode).
    params: dict of PyTorch-layout weights (see init_params).
    compute_dtype: bf16 by default (x + weights; f32 accumulation and f32
        tanh/softplus are kept).  Pass jnp.float32 for bit-tight checks.
    Returns [N, 1] float32.
    """
    N, R = x.shape
    H = params["wrnn"].shape[0]
    L1 = params["wl"].shape[0]          # layers_num - 1

    # ---- tile choice --------------------------------------------------------
    # Small N: one grid step.  Mid N: exactly 2 steps so the v7x megacore can
    # split them.  Huge N: tm=2048 amortizes the ~0.35us/step grid overhead
    # (per-step VMEM is still only a few hundred KiB).
    if tm is None:
        if N <= 512:
            tm = 128 * pl.cdiv(N, 128)
        elif N <= 4096:
            tm = 128 * pl.cdiv(pl.cdiv(N, 2), 128)
        else:
            tm = 2048
    tm = 128 * pl.cdiv(max(tm, 128), 128)
    n_pad = tm * pl.cdiv(N, tm)

    # x goes in as-is (N, R): no transpose, no pad.  Partial edge blocks only
    # pollute lanes >= N, which are sliced off below.
    x_in = x.astype(compute_dtype)
    # y is tiny; reshape (N,1)->(1,N) is contiguous, pad with 1.0 so log()
    # of padded lanes stays finite.
    y_t = jnp.pad(y.reshape(1, N).astype(jnp.float32),
                  ((0, 0), (0, n_pad - N)), constant_values=1.0)

    mu = jnp.asarray(mu_y, jnp.float32).reshape(1)
    sigma = jnp.asarray(sigma_y, jnp.float32).reshape(1)

    wy = params["wy"].astype(compute_dtype)             # (H, 1)
    wrnn = params["wrnn"].astype(compute_dtype)         # (H, R)
    brnn = params["brnn"].astype(jnp.float32)           # (H, 1)
    wout = params["wout"].astype(compute_dtype)         # (1, H)
    bout = params["bout"].astype(jnp.float32).reshape(1)
    if L1 > 0:
        wl = params["wl"].astype(compute_dtype)         # (L1, H, H)
        bl = params["bl"].astype(jnp.float32)           # (L1, H, 1)
    else:  # keep BlockSpec shapes non-empty; kernel loop runs 0 times
        wl = jnp.zeros((1, H, H), compute_dtype)
        bl = jnp.zeros((1, H, 1), jnp.float32)
    lb = wl.shape[0]

    kernel = functools.partial(_hazard_kernel, log_mode, L1)
    smem = pl.BlockSpec(memory_space=pltpu.MemorySpace.SMEM)

    grid = (n_pad // tm,)
    in_specs = [
        smem,                                           # mu_y     (1,)
        smem,                                           # sigma_y  (1,)
        smem,                                           # softplus bias (1,)
        pl.BlockSpec((tm, R), lambda i: (i, 0)),        # x, untransposed
        pl.BlockSpec((1, tm), lambda i: (0, i)),        # y^T
        pl.BlockSpec((H, 1), lambda i: (0, 0)),         # linear_y weight
        pl.BlockSpec((H, R), lambda i: (0, 0)),         # linear_rnn weight
        pl.BlockSpec((H, 1), lambda i: (0, 0)),         # linear_rnn bias
        pl.BlockSpec((lb, H, H), lambda i: (0, 0, 0)),  # hidden weights
        pl.BlockSpec((lb, H, 1), lambda i: (0, 0, 0)),  # hidden biases
        pl.BlockSpec((1, H), lambda i: (0, 0)),         # softplus weight
    ]
    out_spec = pl.BlockSpec((1, tm), lambda i: (0, i))

    out_t = pl.pallas_call(
        kernel,
        out_shape=jax.ShapeDtypeStruct((1, n_pad), jnp.float32),
        grid_spec=pltpu.PrefetchScalarGridSpec(
            num_scalar_prefetch=0,
            grid=grid,
            in_specs=in_specs,
            out_specs=out_spec,
        ),
        compiler_params=pltpu.CompilerParams(
            dimension_semantics=("parallel",)),
    )(mu, sigma, bout, x_in, y_t, wy, wrnn, brnn, wl, bl, wout)

    return out_t[0, :N].reshape(N, 1)


def init_params(key, rnn_output_dim, hidden_dim, layers_num):
    """Deterministic synthetic parameter init (PyTorch-layout weights)."""
    ks = jax.random.split(key, 7)
    L1 = layers_num - 1

    def unif(k, shape, fan_in):
        bound = 1.0 / jnp.sqrt(fan_in)
        return jax.random.uniform(k, shape, jnp.float32, -bound, bound)

    return {
        # linear_y: Linear(1, H, bias=False) -> weight (H, 1)
        "wy": unif(ks[0], (hidden_dim, 1), 1),
        # linear_rnn: Linear(R, H) -> weight (H, R), bias (H, 1)
        "wrnn": unif(ks[1], (hidden_dim, rnn_output_dim), rnn_output_dim),
        "brnn": unif(ks[2], (hidden_dim, 1), rnn_output_dim),
        # hidden stack: (layers_num-1) x Linear(H, H) + Tanh
        "wl": unif(ks[3], (L1, hidden_dim, hidden_dim), hidden_dim),
        "bl": unif(ks[4], (L1, hidden_dim, 1), hidden_dim),
        # softplus head: Linear(H, 1)
        "wout": unif(ks[5], (1, hidden_dim), hidden_dim),
        "bout": unif(ks[6], (1, 1), hidden_dim),
    }


def _reference(x, y, mu_y, sigma_y, params, log_mode=True):
    y_nmlz = ((jnp.log(y) if log_mode else y) - mu_y) / sigma_y
    hidden = jnp.tanh(x @ params["wrnn"].T + params["brnn"].T
                      + y_nmlz * params["wy"].T)
    for i in range(params["wl"].shape[0]):
        hidden = jnp.tanh(hidden @ params["wl"][i].T + params["bl"][i].T)
    z = hidden @ params["wout"].T + params["bout"]
    return jax.nn.softplus(z)


if __name__ == "__main__":
    # small shapes consistent with the module
    rnn_output_dim = 16
    hidden_dim = 32
    layers_num = 3
    log_mode = True
    N = 64                      # batch (number of events)

    key = jax.random.PRNGKey(0)
    k_p, k_x, k_y = jax.random.split(key, 3)

    params = init_params(k_p, rnn_output_dim, hidden_dim, layers_num)
    x = jax.random.normal(k_x, (N, rnn_output_dim), jnp.float32)
    # y must be positive for log_mode
    y = jax.random.uniform(k_y, (N, 1), jnp.float32, 0.1, 2.0)
    mu_y, sigma_y = 0.25, 1.5

    ref = _reference(x, y, mu_y, sigma_y, params, log_mode=log_mode)

    # Tight correctness check on the f32 path.
    out_f32 = pt_hazard_forward(x, y, mu_y, sigma_y, params,
                                log_mode=log_mode,
                                compute_dtype=jnp.float32)
    out_f32 = jax.block_until_ready(out_f32)
    assert out_f32.shape == (N, 1)
    assert jnp.allclose(out_f32, ref, atol=1e-5, rtol=1e-4), (
        float(jnp.max(jnp.abs(out_f32 - ref))))

    # Default (bf16 x/weights, f32 accumulation) path: loose sanity bound;
    # the tight correctness check is the f32 run above.
    out_bf16 = pt_hazard_forward(x, y, mu_y, sigma_y, params,
                                 log_mode=log_mode)
    out_bf16 = jax.block_until_ready(out_bf16)
    assert out_bf16.shape == (N, 1)
    assert jnp.allclose(out_bf16, ref, atol=1e-1, rtol=1e-1), (
        float(jnp.max(jnp.abs(out_bf16 - ref))))

    print("KERNEL_OK")
</pallas_src>

<mosaic_0001>
module attributes {stable_mosaic.version = 11 : i64} {
  func.func @_hazard_kernel(%arg0: i32, %arg1: memref<1xf32, #tpu.memory_space<smem>>, %arg2: memref<1xf32, #tpu.memory_space<smem>>, %arg3: memref<1xf32, #tpu.memory_space<smem>>, %arg4: memref<128x16xf32, #tpu.memory_space<vmem>>, %arg5: memref<1x128xf32, #tpu.memory_space<vmem>>, %arg6: memref<32x1xf32, #tpu.memory_space<vmem>>, %arg7: memref<32x16xf32, #tpu.memory_space<vmem>>, %arg8: memref<32x1xf32, #tpu.memory_space<vmem>>, %arg9: memref<2x32x32xf32, #tpu.memory_space<vmem>>, %arg10: memref<2x32x1xf32, #tpu.memory_space<vmem>>, %arg11: memref<1x32xf32, #tpu.memory_space<vmem>>, %arg12: memref<1x128xf32, #tpu.memory_space<vmem>>) attributes {dimension_semantics = [#tpu.dimension_semantics<parallel>], iteration_bounds = array<i64: 1>, scalar_prefetch = 0 : i64, scratch_operands = 0 : i64, tpu.core_type = #tpu.core_type<tc>, window_params = [{transform_indices = @transform_0, window_bounds = array<i64: 1>}, {transform_indices = @transform_1, window_bounds = array<i64: 1>}, {transform_indices = @transform_2, window_bounds = array<i64: 1>}, {transform_indices = @transform_3, window_bounds = array<i64: 128, 16>}, {transform_indices = @transform_4, window_bounds = array<i64: 1, 128>}, {pipeline_mode = #tpu.pipeline_mode<synchronous>, transform_indices = @transform_5, window_bounds = array<i64: 32, 1>}, {pipeline_mode = #tpu.pipeline_mode<synchronous>, transform_indices = @transform_6, window_bounds = array<i64: 32, 16>}, {pipeline_mode = #tpu.pipeline_mode<synchronous>, transform_indices = @transform_7, window_bounds = array<i64: 32, 1>}, {pipeline_mode = #tpu.pipeline_mode<synchronous>, transform_indices = @transform_8, window_bounds = array<i64: 2, 32, 32>}, {pipeline_mode = #tpu.pipeline_mode<synchronous>, transform_indices = @transform_9, window_bounds = array<i64: 2, 32, 1>}, {pipeline_mode = #tpu.pipeline_mode<synchronous>, transform_indices = @transform_10, window_bounds = array<i64: 1, 32>}, {transform_indices = @transform_11, window_bounds = array<i64: 1, 128>}]} {
    %c0 = arith.constant 0 : index
    %c0_0 = arith.constant 0 : index
    %0 = vector.load %arg5[%c0, %c0_0] : memref<1x128xf32, #tpu.memory_space<vmem>>, vector<1x128xf32>
    %1 = math.log %0 : vector<1x128xf32>
    %c0_1 = arith.constant 0 : index
    %2 = memref.load %arg1[%c0_1] : memref<1xf32, #tpu.memory_space<smem>>
    %3 = vector.broadcast %2 : f32 to vector<1x128xf32>
    %4 = arith.subf %1, %3 : vector<1x128xf32>
    %c0_2 = arith.constant 0 : index
    %5 = memref.load %arg2[%c0_2] : memref<1xf32, #tpu.memory_space<smem>>
    %6 = vector.broadcast %5 : f32 to vector<1x128xf32>
    %7 = arith.divf %4, %6 : vector<1x128xf32>
    %c0_3 = arith.constant 0 : index
    %c0_4 = arith.constant 0 : index
    %8 = vector.load %arg7[%c0_3, %c0_4] : memref<32x16xf32, #tpu.memory_space<vmem>>, vector<32x16xf32>
    %c0_5 = arith.constant 0 : index
    %c0_6 = arith.constant 0 : index
    %9 = vector.load %arg4[%c0_5, %c0_6] : memref<128x16xf32, #tpu.memory_space<vmem>>, vector<128x16xf32>
    %cst = arith.constant dense<0.000000e+00> : vector<32x128xf32>
    %10 = tpu.matmul %8, %9, %cst {dimension_numbers = #tpu.dot_dimension_numbers<[1], [1], [0], [0], [0, 0, 1, 0], [], []>} : vector<32x16xf32>, vector<128x16xf32>, vector<32x128xf32> -> vector<32x128xf32>
    %c0_7 = arith.constant 0 : index
    %c0_8 = arith.constant 0 : index
    %11 = vector.load %arg8[%c0_7, %c0_8] : memref<32x1xf32, #tpu.memory_space<vmem>>, vector<32x1xf32>
    %12 = vector.broadcast %11 : vector<32x1xf32> to vector<32x128xf32>
    %13 = arith.addf %10, %12 : vector<32x128xf32>
    %c0_9 = arith.constant 0 : index
    %c0_10 = arith.constant 0 : index
    %14 = vector.load %arg6[%c0_9, %c0_10] : memref<32x1xf32, #tpu.memory_space<vmem>>, vector<32x1xf32>
    %15 = vector.broadcast %14 : vector<32x1xf32> to vector<32x128xf32>
    %16 = vector.broadcast %7 : vector<1x128xf32> to vector<32x128xf32>
    %17 = arith.mulf %15, %16 : vector<32x128xf32>
    %18 = arith.addf %13, %17 : vector<32x128xf32>
    %19 = math.tanh %18 : vector<32x128xf32>
    %c0_11 = arith.constant 0 : index
    %c0_12 = arith.constant 0 : index
    %c0_13 = arith.constant 0 : index
    %20 = vector.load %arg9[%c0_11, %c0_12, %c0_13] : memref<2x32x32xf32, #tpu.memory_space<vmem>>, vector<1x32x32xf32>
    %21 = vector.shape_cast %20 : vector<1x32x32xf32> to vector<32x32xf32>
    %cst_14 = arith.constant dense<0.000000e+00> : vector<32x128xf32>
    %22 = tpu.matmul %21, %19, %cst_14 {dimension_numbers = #tpu.dot_dimension_numbers<[1], [0], [0], [1], [0, 0, 1, 1], [], []>} : vector<32x32xf32>, vector<32x128xf32>, vector<32x128xf32> -> vector<32x128xf32>
    %c0_15 = arith.constant 0 : index
    %c0_16 = arith.constant 0 : index
    %c0_17 = arith.constant 0 : index
    %23 = vector.load %arg10[%c0_15, %c0_16, %c0_17] : memref<2x32x1xf32, #tpu.memory_space<vmem>>, vector<1x32x1xf32>
    %24 = vector.shape_cast %23 : vector<1x32x1xf32> to vector<32x1xf32>
    %25 = vector.broadcast %24 : vector<32x1xf32> to vector<32x128xf32>
    %26 = arith.addf %22, %25 : vector<32x128xf32>
    %27 = math.tanh %26 : vector<32x128xf32>
    %c1 = arith.constant 1 : index
    %c0_18 = arith.constant 0 : index
    %c0_19 = arith.constant 0 : index
    %28 = vector.load %arg9[%c1, %c0_18, %c0_19] : memref<2x32x32xf32, #tpu.memory_space<vmem>>, vector<1x32x32xf32>
    %29 = vector.shape_cast %28 : vector<1x32x32xf32> to vector<32x32xf32>
    %cst_20 = arith.constant dense<0.000000e+00> : vector<32x128xf32>
    %30 = tpu.matmul %29, %27, %cst_20 {dimension_numbers = #tpu.dot_dimension_numbers<[1], [0], [0], [1], [0, 0, 1, 1], [], []>} : vector<32x32xf32>, vector<32x128xf32>, vector<32x128xf32> -> vector<32x128xf32>
    %c1_21 = arith.constant 1 : index
    %c0_22 = arith.constant 0 : index
    %c0_23 = arith.constant 0 : index
    %31 = vector.load %arg10[%c1_21, %c0_22, %c0_23] : memref<2x32x1xf32, #tpu.memory_space<vmem>>, vector<1x32x1xf32>
    %32 = vector.shape_cast %31 : vector<1x32x1xf32> to vector<32x1xf32>
    %33 = vector.broadcast %32 : vector<32x1xf32> to vector<32x128xf32>
    %34 = arith.addf %30, %33 : vector<32x128xf32>
    %35 = math.tanh %34 : vector<32x128xf32>
    %c0_24 = arith.constant 0 : index
    %c0_25 = arith.constant 0 : index
    %36 = vector.load %arg11[%c0_24, %c0_25] : memref<1x32xf32, #tpu.memory_space<vmem>>, vector<1x32xf32>
    %cst_26 = arith.constant dense<0.000000e+00> : vector<1x128xf32>
    %37 = tpu.matmul %36, %35, %cst_26 {dimension_numbers = #tpu.dot_dimension_numbers<[1], [0], [0], [1], [0, 0, 1, 1], [], []>} : vector<1x32xf32>, vector<32x128xf32>, vector<1x128xf32> -> vector<1x128xf32>
    %c0_27 = arith.constant 0 : index
    %38 = memref.load %arg3[%c0_27] : memref<1xf32, #tpu.memory_space<smem>>
    %39 = vector.broadcast %38 : f32 to vector<1x128xf32>
    %40 = arith.addf %37, %39 : vector<1x128xf32>
    %cst_28 = arith.constant 0.000000e+00 : f32
    %41 = vector.broadcast %cst_28 : f32 to vector<1x128xf32>
    %42 = arith.maximumf %40, %41 : vector<1x128xf32>
    %43 = vector.broadcast %cst_28 : f32 to vector<1x128xf32>
    %44 = arith.subf %40, %43 : vector<1x128xf32>
    %45 = arith.cmpf one, %44, %44 : vector<1x128xf32>
    %46 = vector.broadcast %cst_28 : f32 to vector<1x128xf32>
    %47 = arith.addf %40, %46 : vector<1x128xf32>
    %48 = math.absf %44 : vector<1x128xf32>
    %cst_29 = arith.constant 0.000000e+00 : f32
    %49 = vector.broadcast %cst_29 : f32 to vector<1x128xf32>
    %50 = arith.subf %49, %48 : vector<1x128xf32>
    %51 = math.exp %50 : vector<1x128xf32>
    %52 = math.log1p %51 : vector<1x128xf32>
    %53 = arith.addf %42, %52 : vector<1x128xf32>
    %54 = arith.select %45, %47, %53 : vector<1x128xi1>, vector<1x128xf32>
    %c0_30 = arith.constant 0 : index
    %c0_31 = arith.constant 0 : index
    %55 = vector.load %arg12[%c0_30, %c0_31] : memref<1x128xf32, #tpu.memory_space<vmem>>, vector<1x128xf32>
    tpu.vector_store %arg12[%c0_30, %c0_31], %54 {strides = array<i32>} : memref<1x128xf32, #tpu.memory_space<vmem>>, vector<1x128xf32>,
    return
  }
  func.func @transform_0(%arg0: i32) -> i32 {
    %c0_i32 = arith.constant 0 : i32
    %c0_i32_0 = arith.constant 0 : i32
    return %c0_i32 : i32
  }
  func.func @transform_1(%arg0: i32) -> i32 {
    %c0_i32 = arith.constant 0 : i32
    %c0_i32_0 = arith.constant 0 : i32
    return %c0_i32 : i32
  }
  func.func @transform_2(%arg0: i32) -> i32 {
    %c0_i32 = arith.constant 0 : i32
    %c0_i32_0 = arith.constant 0 : i32
    return %c0_i32 : i32
  }
  func.func @transform_3(%arg0: i32) -> (i32, i32) {
    %c0_i32 = arith.constant 0 : i32
    %c0_i32_0 = arith.constant 0 : i32
    return %arg0, %c0_i32 : i32, i32
  }
  func.func @transform_4(%arg0: i32) -> (i32, i32) {
    %c0_i32 = arith.constant 0 : i32
    %c0_i32_0 = arith.constant 0 : i32
    return %c0_i32, %arg0 : i32, i32
  }
  func.func @transform_5(%arg0: i32) -> (i32, i32) {
    %c0_i32 = arith.constant 0 : i32
    %c0_i32_0 = arith.constant 0 : i32
    %c0_i32_1 = arith.constant 0 : i32
    return %c0_i32, %c0_i32_0 : i32, i32
  }
  func.func @transform_6(%arg0: i32) -> (i32, i32) {
    %c0_i32 = arith.constant 0 : i32
    %c0_i32_0 = arith.constant 0 : i32
    %c0_i32_1 = arith.constant 0 : i32
    return %c0_i32, %c0_i32_0 : i32, i32
  }
  func.func @transform_7(%arg0: i32) -> (i32, i32) {
    %c0_i32 = arith.constant 0 : i32
    %c0_i32_0 = arith.constant 0 : i32
    %c0_i32_1 = arith.constant 0 : i32
    return %c0_i32, %c0_i32_0 : i32, i32
  }
  func.func @transform_8(%arg0: i32) -> (i32, i32, i32) {
    %c0_i32 = arith.constant 0 : i32
    %c0_i32_0 = arith.constant 0 : i32
    %c0_i32_1 = arith.constant 0 : i32
    %c0_i32_2 = arith.constant 0 : i32
    return %c0_i32, %c0_i32_0, %c0_i32_1 : i32, i32, i32
  }
  func.func @transform_9(%arg0: i32) -> (i32, i32, i32) {
    %c0_i32 = arith.constant 0 : i32
    %c0_i32_0 = arith.constant 0 : i32
    %c0_i32_1 = arith.constant 0 : i32
    %c0_i32_2 = arith.constant 0 : i32
    return %c0_i32, %c0_i32_0, %c0_i32_1 : i32, i32, i32
  }
  func.func @transform_10(%arg0: i32) -> (i32, i32) {
    %c0_i32 = arith.constant 0 : i32
    %c0_i32_0 = arith.constant 0 : i32
    %c0_i32_1 = arith.constant 0 : i32
    return %c0_i32, %c0_i32_0 : i32, i32
  }
  func.func @transform_11(%arg0: i32) -> (i32, i32) {
    %c0_i32 = arith.constant 0 : i32
    %c0_i32_0 = arith.constant 0 : i32
    return %c0_i32, %arg0 : i32, i32
  }
}

</mosaic_0001>

<bundles_post_ra>
// kernel: tpu_custom_call.1
= control target key start
LH: loop header
LB: loop body
LE: loop exit
PB: predicated region body
PF: predicated region fallthrough
CT: control target
= control target key end

     0   :  { %vm96_vm0 = vcmask 130048   ;;  %v942_v6 = vmov 0   ;;  %s1217_s0 = inlined_call_operand.<no memory space> [shape: f32[1], index: 0, kind: input, shape index: {}]   ;;  %s1218_s1 = inlined_call_operand.<no memory space> [shape: f32[1], index: 1, kind: input, shape index: {}]   ;;  %s1219_s2 = inlined_call_operand.<no memory space> [shape: f32[1], index: 2, kind: input, shape index: {}]   ;;  %s1220_s3 = inlined_call_operand.vmem [shape: f32[64,16], index: 3, kind: input, shape index: {}]   ;;  %s1221_s4 = inlined_call_operand.vmem [shape: f32[1,128], index: 4, kind: input, shape index: {}]   ;;  %s1222_s5 = inlined_call_operand.vmem [shape: f32[32,1], index: 5, kind: input, shape index: {}]   ;;  %s1223_s6 = inlined_call_operand.vmem [shape: f32[32,16], index: 6, kind: input, shape index: {}]   ;;  %s1224_s7 = inlined_call_operand.vmem [shape: f32[32,1], index: 7, kind: input, shape index: {}]   ;;  %s1225_s8 = inlined_call_operand.vmem [shape: f32[2,32,32], index: 8, kind: input, shape index: {}]   ;;  %s1226_s9 = inlined_call_operand.vmem [shape: f32[2,32,1], index: 9, kind: input, shape index: {}]   ;;  %s1227_s10 = inlined_call_operand.vmem [shape: f32[1,32], index: 10, kind: input, shape index: {}]   ;;  %s1228_s11 = inlined_call_operand.hbm [shape: f32[1,128], index: 11, kind: output, shape index: {}]  }
   0x1   :  { %v56_v0 = vld [vmem:[%s1220_s3] sm:$0xff]  ;;  %v57_v1 = vld [vmem:[%s1220_s3 + $0x8] sm:$0xff]  ;;  %v58_v2 = vld [vmem:[%s1220_s3 + $0x10] sm:$0xff]  ;;  %885 = vset.pattern.permute.xlu1 %v942_v6  ;;  %884 = vset.pattern.permute.xlu0 %v942_v6 }
   0x2   :  { %v809_v3 = vpack.c.bf16 %v57_v1, %v56_v0  ;;  %vm1018_vm1 = vmpackc.low %vm96_vm0, %vm96_vm0  ;;  %v59_v5 = vld [vmem:[%s1220_s3 + $0x18] sm:$0xff]  ;;  %v52_v8 = vld [vmem:[%s1223_s6] sm:$0xff] }
   0x3   :  { %v815_v7 = vpack.c.bf16 %v59_v5, %v58_v2  ;;  %v60_v9 = vld [vmem:[%s1220_s3 + $0x20] sm:$0xff]  ;;  %v61_v10 = vld [vmem:[%s1220_s3 + $0x28] sm:$0xff]  ;;  %764 = vmatprep.mubr.msk.f32.mxu0 %vm96_vm0, %v52_v8 }
   0x4   :  { %811 = vmatprep.subr.msk.bf16.mxu0 %vm1018_vm1, %v809_v3  ;;  %v242_v11 = vld [vmem:[%s1222_s5] sm:$0xff]  ;;  %v821_v13 = vpack.c.bf16 %v61_v10, %v60_v9  ;;  %v243_v14 = vld [vmem:[%s1222_s5 + $0x8] sm:$0xff] }
   0x5   :  { %814 = vmatpush3.bf16.xpose.msk.msra.mxu0 %vm1018_vm1, %v809_v3  ;;  %v72_v12 = vld [vmem:[%s1224_s7] sm:$0xff]  ;;  %248 = vperm.xlu1 %885, %v242_v11   ;;  %v73_v15 = vld [vmem:[%s1224_s7 + $0x8] sm:$0xff] }
   0x6   :  { %817 = vmatprep.subr.msk.bf16.mxu0 %vm1018_vm1, %v815_v7  ;;  %78 = vperm.xlu0 %884, %v72_v12  }
   0x9   :  { %253 = vperm.xlu1 %885, %v243_v14  }
   0xd   :  { %820 = vmatpush3.bf16.xpose.msk.msra.mxu0 %vm1018_vm1, %v815_v7 }
   0xe   :  { %19 = vsyncpa [#allocation6], 0  ;;  %823 = vmatprep.subr.msk.bf16.mxu0 %vm1018_vm1, %v821_v13  ;;  %83 = vperm.xlu0 %884, %v73_v15   ;;  %v75_v16 = vld [vmem:[%s1224_s7 + $0x18] sm:$0xff]  ;;  %v62_v17 = vld [vmem:[%s1220_s3 + $0x30] sm:$0xff]  ;;  %vm312_vm2 = vcmask 261120   ;;  %v49_v48 = vstv %s1218_s1  ;;  %v267_v50 = vlaneseq  ;;  %v46_v53 = vstv %s1217_s0 }
   0xf   :  { %v63_v18 = vld [vmem:[%s1220_s3 + $0x38] sm:$0xff]  ;;  %v74_v19 = vld [vmem:[%s1224_s7 + $0x10] sm:$0xff]  ;;  %93 = vperm.xlu1 %885, %v75_v16   ;;  %v289_v23 = vld [vmem:[%s1226_s9 + $0x8] sm:$0xff]  ;;  %vm944_vm3 = vmmov 0  }
  0x10   :  { %v827_v20 = vpack.c.bf16 %v63_v18, %v62_v17  ;;  %v245_v21 = vld [vmem:[%s1222_s5 + $0x18] sm:$0xff]  ;;  %v244_v22 = vld [vmem:[%s1222_s5 + $0x10] sm:$0xff]  ;;  %v64_v24 = vld [vmem:[%s1220_s3 + $0x40] sm:$0xff]  ;;  %v268_v55 = vshrl.u32 %v267_v50, 7  ;;  %v943_v50 = vmov 0.0|0.0  }
  0x11   :  { %v65_v25 = vld [vmem:[%s1220_s3 + $0x48] sm:$0xff]  ;;  %v288_v26 = vld [vmem:[%s1226_s9] sm:$0xff]  ;;  %v291_v28 = vld [vmem:[%s1226_s9 + $0x18] sm:$0xff] }
  0x12   :  { %88 = vperm.xlu0 %884, %v74_v19   ;;  %v833_v27 = vpack.c.bf16 %v65_v25, %v64_v24  ;;  %v290_v29 = vld [vmem:[%s1226_s9 + $0x10] sm:$0xff]  ;;  %v683_v30 = vld [vmem:[%s1226_s9 + $0x28] sm:$0xff]  ;;  %v67_v32 = vld [vmem:[%s1220_s3 + $0x58] sm:$0xff]  ;;  %v269_v59 = vsub.s32 0, %v268_v55 }
  0x13   :  { %263 = vperm.xlu1 %885, %v245_v21   ;;  %v66_v31 = vld [vmem:[%s1220_s3 + $0x50] sm:$0xff]  ;;  %v682_v33 = vld [vmem:[%s1226_s9 + $0x20] sm:$0xff]  ;;  %v685_v35 = vld [vmem:[%s1226_s9 + $0x38] sm:$0xff] }
  0x14   :  { %v839_v34 = vpack.c.bf16 %v67_v32, %v66_v31  ;;  %v684_v36 = vld [vmem:[%s1226_s9 + $0x30] sm:$0xff]  ;;  %v68_v37 = vld [vmem:[%s1220_s3 + $0x60] sm:$0xff]  ;;  %v69_v38 = vld [vmem:[%s1220_s3 + $0x68] sm:$0xff] }
  0x15   :  { %826 = vmatpush3.bf16.xpose.msk.msra.mxu0 %vm1018_vm1, %v821_v13  ;;  %v845_v39 = vpack.c.bf16 %v69_v38, %v68_v37  ;;  %v70_v40 = vld [vmem:[%s1220_s3 + $0x70] sm:$0xff]  ;;  %v71_v41 = vld [vmem:[%s1220_s3 + $0x78] sm:$0xff]  ;;  %v53_v43 = vld [vmem:[%s1223_s6 + $0x8] sm:$0xff] }
  0x16   :  { %829 = vmatprep.subr.msk.bf16.mxu0 %vm1018_vm1, %v827_v20  ;;  %258 = vperm.xlu0 %884, %v244_v22   ;;  %v851_v42 = vpack.c.bf16 %v71_v41, %v70_v40  ;;  %v54_v44 = vld [vmem:[%s1223_s6 + $0x10] sm:$0xff]  ;;  %v55_v45 = vld [vmem:[%s1223_s6 + $0x18] sm:$0xff]  ;;  %v284_v46 = vld [vmem:[%s1225_s8] sm:$0xff] }
  0x17   :  { %299 = vperm.xlu1 %885, %v289_v23   ;;  %778 = vmatprep.mubr.msk.f32.mxu1 %vm312_vm2, %v284_v46  ;;  %v42_v47 = vld [vmem:[%s1221_s4] sm:$0x1]  ;;  %v285_v25 = vld [vmem:[%s1225_s8 + $0x8] sm:$0xff] }
  0x18   :  { %886 = vlog2.f32 %v42_v47  ;;  %v679_v47 = vld [vmem:[%s1225_s8 + $0x28] sm:$0xff] }
  0x19   :  { %888 = vrcp.f32 %v49_v48  ;;  %v680_v48 = vld [vmem:[%s1225_s8 + $0x30] sm:$0xff] }
  0x1a   :  { %294 = vperm.xlu0 %884, %v288_v26   ;;  %v286_v26 = vld [vmem:[%s1225_s8 + $0x10] sm:$0xff] }
  0x1b   :  { %309 = vperm.xlu1 %885, %v291_v28   ;;  %v678_v28 = vld [vmem:[%s1225_s8 + $0x20] sm:$0xff] }
  0x1d   :  { %832 = vmatpush3.bf16.xpose.msk.msra.mxu0 %vm1018_vm1, %v827_v20 }
  0x1e   :  { %835 = vmatprep.subr.msk.bf16.mxu0 %vm1018_vm1, %v833_v27  ;;  %304 = vperm.xlu0 %884, %v290_v29  }
  0x1f   :  { %431 = vperm.xlu1 %885, %v683_v30  }
  0x22   :  { %426 = vperm.xlu0 %884, %v682_v33   ;;  %v887_v49 = vpop.eup %886 }
  0x23   :  { %441 = vperm.xlu1 %885, %v685_v35   ;;  %v44_v51 = vmul.f32 0.6931472, %v887_v49  ;;  %v889_v57 = vpop.eup %888  ;;  %v681_v49 = vld [vmem:[%s1225_s8 + $0x38] sm:$0xff] }
  0x25   :  { %838 = vmatpush3.bf16.xpose.msk.msra.mxu0 %vm1018_vm1, %v833_v27  ;;  %v47_v56 = vsub.f32 %v44_v51, %v46_v53  ;;  %v287_v27 = vld [vmem:[%s1225_s8 + $0x18] sm:$0xff]  ;;  %v945_v51 = vmov 0.0  }
  0x26   :  { %841 = vmatprep.subr.msk.bf16.mxu0 %vm1018_vm1, %v839_v34  ;;  %436 = vperm.xlu0 %884, %v684_v36  }
  0x27   :  { %v51_v60 = vmul.f32 %v889_v57, %v47_v56 }
  0x29   :  { %v270_v62 = vrot.slane %v51_v60, %v269_v59 }
  0x2d   :  { %844 = vmatpush3.bf16.xpose.msk.msra.mxu0 %vm1018_vm1, %v839_v34 }
  0x2e   :  { %847 = vmatprep.subr.msk.bf16.mxu0 %vm1018_vm1, %v845_v39 }
  0x35   :  { %850 = vmatpush3.bf16.xpose.msk.msra.mxu0 %vm1018_vm1, %v845_v39 }
  0x36   :  { %853 = vmatprep.subr.msk.bf16.mxu0 %vm1018_vm1, %v851_v42 }
  0x3d   :  { %856 = vmatpush3.bf16.xpose.msk.msra.mxu0 %vm1018_vm1, %v851_v42 }
  0x44   :  { %765 = vmatmul.mubr.msk.f32.vlgmr.msra.gmra.mrb[0].mxu0 %vm96_vm0, %v53_v43 }
  0x45   :  { %767 = vmatprep.mubr.msk.f32.mxu0 %vm96_vm0, %v54_v44 }
  0x48   :  { %768 = vmatmul.mubr.msk.f32.gmra.mrb[2].mxu0 %vm96_vm0, %v55_v45 }
  0x84   :  { %v249_v52 = vpop.permute.xlu1 %248 }
  0x85   :  { %v79_v54 = vpop.permute.xlu0 %78  ;;  %v272_v5 = vmul.f32 %v270_v62, %v249_v52 }
  0x88   :  { %v254_v58 = vpop.permute.xlu1 %253 }
  0x89   :  { %v273_v2 = vmul.f32 %v270_v62, %v254_v58 }
  0x8d   :  { %v84_v61 = vpop.permute.xlu0 %83 }
  0x8e   :  { %v94_v63 = vpop.permute.xlu1 %93 }
  0x91   :  { %v89_v0 = vpop.permute.xlu0 %88 }
  0x92   :  { %v264_v8 = vpop.permute.xlu1 %263 }
  0x93   :  { %v275_v11 = vmul.f32 %v270_v62, %v264_v8 }
  0x95   :  { %v259_v12 = vpop.permute.xlu0 %258 }
  0x96   :  { %v274_v15 = vmul.f32 %v270_v62, %v259_v12  ;;  %v300_v29 = vpop.permute.xlu1 %299 }
  0x99   :  { %v295_v30 = vpop.permute.xlu0 %294 }
  0x9a   :  { %v310_v35 = vpop.permute.xlu1 %309 }
  0x9d   :  { %v305_v37 = vpop.permute.xlu0 %304 }
  0x9e   :  { %v432_v52 = vpop.permute.xlu1 %431 }
  0xa1   :  { %v427_v53 = vpop.permute.xlu0 %426 }
  0xa2   :  { %v442_v58 = vpop.permute.xlu1 %441 }
  0xa5   :  { %v437_v60 = vpop.permute.xlu0 %436 }
 0x117   :  { %v766_v1 = vpop.f32.mrb[0].mxu0 }
 0x118   :  { %v229_v3 = vadd.f32 %v766_v1, %v84_v61  ;;  %v223_v4 = vpop.f32.mrb[1].mxu0 }
 0x119   :  { %v224_v6 = vadd.f32 %v223_v4, %v79_v54 }
 0x11a   :  { %v277_v7 = vadd.f32 %v273_v2, %v229_v3 }
 0x11b   :  { %v276_v9 = vadd.f32 %v272_v5, %v224_v6  ;;  %v769_v10 = vpop.f32.mrb[2].mxu0  ;;  %v545_v6 = vld [vmem:[%s1227_s10] sm:$0x1]  ;;  %s946_s10 = smov [#allocation5]  }
 0x11c   :  { %890 = vtanh.f32 %v277_v7  ;;  %v239_v13 = vadd.f32 %v769_v10, %v94_v63  ;;  %v233_v14 = vpop.f32.mrb[3].mxu0  ;;  %v547_v7 = vstv %s1219_s2  ;;  %s646_s2 = sshll.u32 %s946_s10, 4  ;;  %s647_s2 = int_to_ptr.vmem [resolvable:$true] %s646_s2 }
 0x11d   :  { %892 = vtanh.f32 %v276_v9  ;;  %v234_v16 = vadd.f32 %v233_v14, %v89_v0  ;;  %s918_s3 = scalar_lea.vmem %s647_s2, 16  ;;  %s922_s25 = scalar_lea.vmem %s647_s2, 32 }
 0x11e   :  { %v279_v17 = vadd.f32 %v275_v11, %v239_v13  ;;  %p919_p0 = scmp.ne.s32.totalorder %s647_s2, %s918_s3  ;;  %p923_p1 = scmp.lt.s32.totalorder %s647_s2, %s647_s2 }
 0x11f   :  { %v278_v18 = vadd.f32 %v274_v15, %v234_v16  ;;  %p924_p2 = scmp.lt.s32.totalorder %s922_s25, %s918_s3 }
 0x120   :  { %894 = vtanh.f32 %v279_v17 }
 0x121   :  { %896 = vtanh.f32 %v278_v18  ;;  %p925_p3 = por %p924_p2, %p923_p1 }
 0x123   :  { %p926_p4 = pnand %p925_p3, %p919_p0 }
 0x126   :  { %v891_v19 = vpop.eup %890 }
 0x127   :  { %v893_v20 = vpop.eup %892 }
 0x128   :  { %v857_v21 = vpack.c.bf16 %v891_v19, %v893_v20 }
 0x12a   :  { %v895_v22 = vpop.eup %894  ;;  %858 = vmatprep.subr.bf16.mxu1 %v857_v21 }
 0x12b   :  { %v897_v23 = vpop.eup %896  ;;  %860 = vmatpush3.bf16.msra.mxu1 %v857_v21 }
 0x12c   :  { %v861_v24 = vpack.c.bf16 %v895_v22, %v897_v23 }
 0x12e   :  { %862 = vmatprep.subr.bf16.mxu1 %v861_v24 }
 0x12f   :  { %864 = vmatpush3.bf16.msra.mxu1 %v861_v24 }
 0x132   :  { %779 = vmatmul.mubr.msk.f32.vlgmr.msra.gmra.mrb[0].mxu1 %vm312_vm2, %v285_v25 }
 0x133   :  { %781 = vmatprep.mubr.msk.f32.mxu1 %vm312_vm2, %v286_v26 }
 0x136   :  { %782 = vmatmul.mubr.msk.f32.gmra.mrb[2].mxu1 %vm312_vm2, %v287_v27 }
 0x137   :  { %792 = vmatprep.mubr.msk.f32.mxu1 %vm312_vm2, %v678_v28 }
 0x205   :  { %v780_v31 = vpop.f32.mrb[0].mxu1 }
 0x206   :  { %v397_v32 = vadd.f32 %v780_v31, %v300_v29  ;;  %v391_v33 = vpop.f32.mrb[1].mxu1 }
 0x207   :  { %v392_v34 = vadd.f32 %v391_v33, %v295_v30 }
 0x208   :  { %898 = vtanh.f32 %v397_v32 }
 0x209   :  { %900 = vtanh.f32 %v392_v34  ;;  %v783_v36 = vpop.f32.mrb[2].mxu1 }
 0x20a   :  { %v407_v38 = vadd.f32 %v783_v36, %v310_v35  ;;  %v401_v39 = vpop.f32.mrb[3].mxu1 }
 0x20b   :  { %v402_v40 = vadd.f32 %v401_v39, %v305_v37 }
 0x20c   :  { %902 = vtanh.f32 %v407_v38 }
 0x20d   :  { %904 = vtanh.f32 %v402_v40 }
 0x212   :  { %v899_v41 = vpop.eup %898 }
 0x213   :  { %v901_v42 = vpop.eup %900 }
 0x214   :  { %v865_v43 = vpack.c.bf16 %v899_v41, %v901_v42 }
 0x216   :  { %v903_v44 = vpop.eup %902  ;;  %866 = vmatprep.subr.bf16.mxu1 %v865_v43 }
 0x217   :  { %v905_v45 = vpop.eup %904  ;;  %868 = vmatpush3.bf16.msra.mxu1 %v865_v43 }
 0x218   :  { %v869_v46 = vpack.c.bf16 %v903_v44, %v905_v45 }
 0x21a   :  { %870 = vmatprep.subr.bf16.mxu1 %v869_v46 }
 0x21b   :  { %872 = vmatpush3.bf16.msra.mxu1 %v869_v46 }
 0x21c   :  { %873 = vmatprep.subr.bf16.mxu1 %v943_v50 }
 0x21e   :  { %793 = vmatmul.mubr.msk.f32.vlgmr.msra.gmra.mrb[4].mxu1 %vm312_vm2, %v679_v47 }
 0x21f   :  { %795 = vmatprep.mubr.msk.f32.mxu1 %vm312_vm2, %v680_v48 }
 0x222   :  { %796 = vmatmul.mubr.msk.f32.gmra.mrb[6].mxu1 %vm312_vm2, %v681_v49 }
 0x223   :  { %806 = vmatprep.mubr.msk.f32.mxu1 %vm944_vm3, %v945_v51 }
 0x2f1   :  { %v794_v54 = vpop.f32.mrb[4].mxu1 }
 0x2f2   :  { %v528_v55 = vadd.f32 %v794_v54, %v432_v52  ;;  %v522_v56 = vpop.f32.mrb[5].mxu1 }
 0x2f3   :  { %v523_v57 = vadd.f32 %v522_v56, %v427_v53 }
 0x2f4   :  { %906 = vtanh.f32 %v528_v55 }
 0x2f5   :  { %908 = vtanh.f32 %v523_v57  ;;  %v797_v59 = vpop.f32.mrb[6].mxu1 }
 0x2f6   :  { %v538_v61 = vadd.f32 %v797_v59, %v442_v58  ;;  %v532_v62 = vpop.f32.mrb[7].mxu1 }
 0x2f7   :  { %v533_v63 = vadd.f32 %v532_v62, %v437_v60 }
 0x2f8   :  { %910 = vtanh.f32 %v538_v61 }
 0x2f9   :  { %912 = vtanh.f32 %v533_v63 }
 0x2fe   :  { %v907_v0 = vpop.eup %906 }
 0x2ff   :  { %v909_v1 = vpop.eup %908 }
 0x300   :  { %v874_v2 = vpack.c.bf16 %v907_v0, %v909_v1 }
 0x302   :  { %v911_v3 = vpop.eup %910  ;;  %875 = vmatpush3.bf16.msra.mxu1 %v874_v2 }
 0x303   :  { %v913_v4 = vpop.eup %912  ;;  %876 = vmatprep.subr.bf16.mxu1 %v943_v50 }
 0x304   :  { %v877_v5 = vpack.c.bf16 %v911_v3, %v913_v4 }
 0x306   :  { %878 = vmatpush3.bf16.msra.mxu1 %v877_v5 }
 0x309   :  { %807 = vmatmul.mubr.msk.f32.vlgmr.msra.gmra.mrb[8].mxu1 %vm312_vm2, %v545_v6 }
 0x3dc   :  { %v617_v8 = vpop.f32.mrb[8].mxu1 }
 0x3dd   :  { %v618_v9 = vadd.f32 %v617_v8, %v547_v7  ;;  %v808_v10 = vpop.f32.mrb[9].mxu1 }
 0x3df   :  { %v624_v11 = vand.u32 2147483647, %v618_v9  ;;  %v621_v22 = vmax.f32 %v618_v9, 0.0  ;;  %vm622_vm5 = vcmp.ne.f32.partialorder %v618_v9, %v618_v9 }
 0x3e1   :  { %v625_v12 = vsub.f32 0.0, %v624_v11 }
 0x3e3   :  { %v626_v13 = vmul.f32 1.442695, %v625_v12 }
 0x3e5   :  { %914 = vpow2.f32 %v626_v13 }
 0x3ef   :  { %v915_v14 = vpop.eup %914 }
 0x3f0   :  { %v628_v15 = vadd.f32 1.0, %v915_v14  ;;  %v631_v16 = vmul.f32 -0.5, %v915_v14  ;;  %v634_v18 = vand.u32 2147483647, %v915_v14 }
 0x3f2   :  { %916 = vlog2.f32 %v628_v15  ;;  %v632_v17 = vadd.f32 1.0, %v631_v16  ;;  %vm635_vm4 = vcmp.lt.f32.partialorder %v634_v18, 0.0004427343 }
 0x3f4   :  { %v633_v21 = vmul.f32 %v915_v14, %v632_v17 }
 0x3fc   :  { %v917_v19 = vpop.eup %916 }
 0x3fd   :  { %v630_v20 = vmul.f32 0.6931472, %v917_v19 }
 0x3ff   :  { %v636_v23 = vsel %vm635_vm4, %v633_v21, %v630_v20 }
 0x400   :  { %v637_v24 = vadd.f32 %v636_v23, %v621_v22 }
 0x402   :  { %v638_v25 = vsel %vm622_vm5, %v618_v9, %v637_v24 }
 0x403   :  { %639 = vst [vmem:[#allocation5] sm:$0x1] %v638_v25 }
 0x404   :  { %929 = shalt.err (!%p926_p4)
}
 0x405   :  { %s930_s28 = scalar_lea.hbm %s1228_s11, 16 }
 0x406   :  { %p931_p5 = scmp.ne.s32.totalorder %s1228_s11, %s930_s28  ;;  %p934_p6 = scmp.lt.u32.totalorder %s930_s28, %s1228_s11 }
 0x408   :  { %p936_p7 = pnand %p934_p6, %p931_p5 }
 0x40a   :  { %939 = shalt.err (!%p936_p7)
}
 0x40b   :  { %649 = dma.vmem_to_hbm [thread:$0]  %s647_s2, 16, %s1228_s11, [#allocation6]  }
 0x40c   :  { %940 = dma.done.wait [#allocation6], 16  }
 0x40d   :  { %941 = vsyncadd [#allocation6], 4294967280 }
 0x40e   :  { %653 = vsyncpa [#allocation6], 1 }

</bundles_post_ra>
